<compile_context>
chip_gen: v5e
topology: v5e:2x2
jax: 0.10.0
libtpu: 0.0.40
codegen_flags: <defaults>
</compile_context>

<pallas_src>
import functools
import math

import jax
import jax.numpy as jnp
from jax import lax
from jax.experimental import pallas as pl
from jax.experimental.pallas import tpu as pltpu

# ----------------------------- model sizes (small test config) -------------
B = 8                      # batch
SEQ = 8                    # token sequence length
VOCAB = 64
TRANSFORMER_DIM = 32       # stand-in for BERT hidden size
TEXT_RED = 32              # text_reduction_dim
CAT_DIM = 32               # category_embedding_dim
BRAND_DIM = 32             # brand_embedding_dim
NUM_DIM = 5                # numeric_dim (4 OHE condition cols + shipping)
STRUCT_RED = 32            # struct_reduction_dim
VECTOR_DIM = TEXT_RED + STRUCT_RED            # 64
HIDDEN_DIMS = [VECTOR_DIM, 64, 64]            # [vector_dim] + hidden_dims
MC_SAMPLES = 16
N_CATEGORY = 50
N_BRAND = 40

ALPHA, THETA = 2.0, 100.0            # gamma_params
TARGET_RANGE = (0.0, 600.0)
NORMAL_PROB = 0.3
NORMAL_SIGMA_DIVIDER = 4.0
UNIFORM_PROB = 0.3
UNIFORM_RANGE = 1000.0

# ----------------------------- kernel layout constants ---------------------
H = HIDDEN_DIMS[0]                   # all hidden widths equal (64)
assert HIDDEN_DIMS == [H, H, H]
N_COLS = MC_SAMPLES + 1              # observed t + mc_samples rows per example
TB = B                               # batch tile per grid step (grid=(B//TB,))
XZ_RAW = 2 * TRANSFORMER_DIM + CAT_DIM + BRAND_DIM + NUM_DIM + 1   # 134
KPACK = 144                          # padded K, multiple of 16 (bf16 sublanes)
NF = TB * N_COLS                     # flattened rows per grid step (136)
assert B % TB == 0 and NF % 8 == 0


# ----------------------------- the fused Pallas kernel ---------------------
def _ebm_fused_kernel(xz_ref, t_ref, w_all_ref, vecs_ref, out_ref):
    dot = functools.partial(jnp.dot, preferred_element_type=jnp.float32)
    bf16 = jnp.bfloat16

    vecs = vecs_ref[...]                                   # (4, H) f32
    w0_t, b1, b2, w3 = vecs[0:1], vecs[1:2], vecs[2:3], vecs[3:4]

    # per-example part of energy-MLP layer 0 (text/struct reduction linears and
    # b0 are folded into w_all[0:KPACK]; bias rides the ones-column of xz):
    #   h0x[b] = x[b] @ W0[:Dv] + b0
    h0x = dot(xz_ref[...], w_all_ref[0:KPACK, :])          # (TB, H) f32

    # replicate example rows onto the flattened (example, sample) rows with an
    # in-kernel iota one-hot matmul -- no HBM traffic for the operator.
    row = lax.broadcasted_iota(jnp.int32, (NF, TB), 0)
    col = lax.broadcasted_iota(jnp.int32, (NF, TB), 1)
    lo = col * N_COLS
    rep = jnp.where((row >= lo) & (row < lo + N_COLS), 1.0, 0.0).astype(bf16)
    h0rep = dot(rep, h0x.astype(bf16))                     # (NF, H) f32

    # scalar-target term (dominant magnitude -> keep it f32 on the VPU), ReLU,
    # and the remaining hidden layers (bf16 MXU operands, f32 accumulate).
    h0 = jnp.maximum(h0rep + t_ref[...] * w0_t, 0.0)
    h1 = jnp.maximum(dot(h0.astype(bf16),
                         w_all_ref[KPACK:KPACK + H, :]) + b1, 0.0)
    h2 = jnp.maximum(dot(h1.astype(bf16),
                         w_all_ref[KPACK + H:KPACK + 2 * H, :]) + b2, 0.0)

    # final H->1 layer: VPU multiply + XLU lane reduction (no N=1 MXU matmul).
    out_ref[...] = jnp.sum(h2 * w3, axis=-1, keepdims=True)   # (NF, 1)


# ----------------------------- proposal sampling / pdf (plain JAX) ---------
def _draw_proposal(key, t):
    b = t.shape[0]
    sigma = (TARGET_RANGE[1] - TARGET_RANGE[0]) / NORMAL_SIGMA_DIVIDER
    k0, k1, k2, k3 = jax.random.split(key, 4)
    u = jax.random.uniform(k0, (b, MC_SAMPLES))
    normal_s = t[:, None] + sigma * jax.random.normal(k1, (b, MC_SAMPLES))
    unif_s = jax.random.uniform(k2, (b, MC_SAMPLES), minval=0.0, maxval=UNIFORM_RANGE)
    gamma_s = jax.random.gamma(k3, ALPHA, (b, MC_SAMPLES)) * THETA
    samples = jnp.where(u < NORMAL_PROB, normal_s,
                        jnp.where(u < NORMAL_PROB + UNIFORM_PROB, unif_s, gamma_s))
    return samples, sigma


def _mixture_pdf(samples, t, sigma):
    normal_pdf = jnp.exp(-0.5 * ((samples - t[:, None]) / sigma) ** 2) / (
        sigma * jnp.sqrt(2.0 * jnp.pi))
    uniform_pdf = jnp.where((samples >= 0.0) & (samples <= UNIFORM_RANGE),
                            1.0 / UNIFORM_RANGE, 0.0)
    log_gamma = ((ALPHA - 1.0) * jnp.log(jnp.maximum(samples, 1e-12))
                 - samples / THETA - math.lgamma(ALPHA) - ALPHA * math.log(THETA))
    gamma_pdf = jnp.where(samples > 0.0, jnp.exp(log_gamma), 0.0)
    return (NORMAL_PROB * normal_pdf + UNIFORM_PROB * uniform_pdf
            + (1.0 - NORMAL_PROB - UNIFORM_PROB) * gamma_pdf)


# ----------------------------- jitted forward ------------------------------
@jax.jit
def forward(params, name_ids, desc_ids, category_name, brand_name, x_numeric, t, key):
    p = params
    hp = jax.lax.Precision.HIGHEST

    # sentence_embed stand-ins: CLS hidden state == embedding of token at pos 0.
    name_cls = p["tok_emb"][name_ids[:, 0]]
    desc_cls = p["tok_emb"][desc_ids[:, 0]]
    cat_emb = p["cat_emb"][category_name]
    brand_emb = p["brand_emb"][brand_name]
    b = name_cls.shape[0]

    # importance-sampling proposal (gamma / gaussian / uniform mixture) + q(s)
    samples, sigma = _draw_proposal(key, t)
    q_array = _mixture_pdf(samples, t, sigma)

    # [t, samples] flattened to one scalar-target column per (example, sample)
    t_col = jnp.concatenate([t[:, None], samples], axis=1).reshape(b * N_COLS, 1)

    # ---- packed activation slab: [name, desc, cat, brand, numeric, 1, pad] --
    ones = jnp.ones((b, 1), jnp.float32)
    xz = jnp.concatenate([name_cls, desc_cls, cat_emb, brand_emb, x_numeric, ones],
                         axis=1)
    xz = jnp.pad(xz, ((0, 0), (0, KPACK - xz.shape[1]))).astype(jnp.bfloat16)

    # ---- fold text/struct reduction linears (+b0) into energy-MLP layer 0 ---
    #   x @ W0[:Dv] = text_in @ (Wt @ W0_text) + struct_in @ (Ws @ W0_struct)
    #                 + (bt @ W0_text + bs @ W0_struct)
    w0 = p["w0"]
    w0_text, w0_struct, w0_t = w0[:TEXT_RED], w0[TEXT_RED:VECTOR_DIM], w0[VECTOR_DIM:]
    w_text = jnp.concatenate([p["w_name"], p["w_desc"]], axis=0)              # (64, 32)
    w_struct = jnp.concatenate([p["w_cat"], p["w_brand"], p["w_num"]], axis=0)  # (69, 32)
    fold_bias = (jnp.dot(p["b_text"], w0_text, precision=hp)
                 + jnp.dot(p["b_struct"], w0_struct, precision=hp) + p["b0"])  # (1, H)
    w_fold = jnp.concatenate(
        [jnp.dot(w_text, w0_text, precision=hp),
         jnp.dot(w_struct, w0_struct, precision=hp),
         fold_bias,
         jnp.zeros((KPACK - XZ_RAW, H), jnp.float32)], axis=0)                 # (144, H)

    # single bf16 weight slab + small f32 vector pack  -> 4 input DMAs total
    w_all = jnp.concatenate([w_fold, p["w1"], p["w2"]], axis=0).astype(jnp.bfloat16)
    vecs = jnp.concatenate([w0_t, p["b1"], p["b2"], p["w3"].T], axis=0)        # (4, H)

    e_col = pl.pallas_call(
        _ebm_fused_kernel,
        out_shape=jax.ShapeDtypeStruct((b * N_COLS, 1), jnp.float32),
        grid=(b // TB,),
        in_specs=[
            pl.BlockSpec((TB, KPACK), lambda i: (i, 0)),
            pl.BlockSpec((TB * N_COLS, 1), lambda i: (i, 0)),
            pl.BlockSpec((KPACK + 2 * H, H), lambda i: (0, 0)),
            pl.BlockSpec((4, H), lambda i: (0, 0)),
        ],
        out_specs=pl.BlockSpec((TB * N_COLS, 1), lambda i: (i, 0)),
        compiler_params=pltpu.CompilerParams(
            dimension_semantics=("parallel",)),
    )(xz, t_col, w_all, vecs)

    energies = e_col.reshape(b, N_COLS) + p["b3"][0, 0]   # final-layer bias here
    y = energies[:, 0:1]          # energy at observed target t
    y_array = energies[:, 1:]     # energies at mc_samples importance samples
    return y, y_array, q_array


# ----------------------------- pure-JAX reference (for a sanity check) -----
def _reference_forward(params, name_ids, desc_ids, category_name, brand_name,
                       x_numeric, t, key):
    hp = jax.lax.Precision.HIGHEST
    p = params
    name_cls = p["tok_emb"][name_ids[:, 0]]
    desc_cls = p["tok_emb"][desc_ids[:, 0]]
    cat_emb = p["cat_emb"][category_name]
    brand_emb = p["brand_emb"][brand_name]

    text = jnp.dot(jnp.concatenate([name_cls, desc_cls], axis=1),
                   jnp.concatenate([p["w_name"], p["w_desc"]], axis=0),
                   precision=hp) + p["b_text"]
    struct = jnp.dot(jnp.concatenate([cat_emb, brand_emb, x_numeric], axis=1),
                     jnp.concatenate([p["w_cat"], p["w_brand"], p["w_num"]], axis=0),
                     precision=hp) + p["b_struct"]
    x = jnp.concatenate([text, struct], axis=1)

    samples, _ = _draw_proposal(key, t)
    t_all = jnp.concatenate([t[:, None], samples], axis=1)            # (B, M+1)
    b, cols = t_all.shape
    x_rep = jnp.broadcast_to(x[:, None, :], (b, cols, VECTOR_DIM))
    z = jnp.concatenate([x_rep, t_all[..., None]], axis=-1).reshape(-1, VECTOR_DIM + 1)

    h = z
    for i in range(3):
        h = jnp.maximum(jnp.dot(h, p[f"w{i}"], precision=hp) + p[f"b{i}"], 0.0)
    e = (jnp.dot(h, p["w3"], precision=hp) + p["b3"]).reshape(b, cols)
    return e[:, 0:1], e[:, 1:]


# ----------------------------- deterministic parameter init ----------------
def init_params(key):
    def dense(k, fan_in, fan_out):
        lim = 1.0 / math.sqrt(fan_in)
        kw, kb = jax.random.split(k)
        w = jax.random.uniform(kw, (fan_in, fan_out), jnp.float32, -lim, lim)
        bias = jax.random.uniform(kb, (1, fan_out), jnp.float32, -lim, lim)
        return w, bias

    keys = jax.random.split(key, 12)
    p = {}
    p["tok_emb"] = jax.random.normal(keys[0], (VOCAB, TRANSFORMER_DIM), jnp.float32)
    p["cat_emb"] = jax.random.normal(keys[1], (N_CATEGORY, CAT_DIM), jnp.float32)
    p["brand_emb"] = jax.random.normal(keys[2], (N_BRAND, BRAND_DIM), jnp.float32)

    # text_reduction_layer: Linear(2*transformer_dim, text_reduction_dim), split
    w_text, p["b_text"] = dense(keys[3], 2 * TRANSFORMER_DIM, TEXT_RED)
    p["w_name"], p["w_desc"] = w_text[:TRANSFORMER_DIM], w_text[TRANSFORMER_DIM:]

    # struct_reduction_layer: Linear(cat+brand+numeric, struct_reduction_dim), split
    struct_dim = CAT_DIM + BRAND_DIM + NUM_DIM
    w_struct, p["b_struct"] = dense(keys[4], struct_dim, STRUCT_RED)
    p["w_cat"] = w_struct[:CAT_DIM]
    p["w_brand"] = w_struct[CAT_DIM:CAT_DIM + BRAND_DIM]
    p["w_num"] = w_struct[CAT_DIM + BRAND_DIM:]

    # energy MLP: (vector_dim+1) -> hidden_dims -> 1
    dims = [VECTOR_DIM + 1] + HIDDEN_DIMS + [1]
    for i in range(4):
        w, bias = dense(keys[5 + i], dims[i], dims[i + 1])
        p[f"w{i}"], p[f"b{i}"] = w, bias
    return p


# ----------------------------- main -----------------------------------------
if __name__ == "__main__":
    root = jax.random.PRNGKey(0)
    kp, kn, kd, kc, kb, kx, kt, ks = jax.random.split(root, 8)

    params = init_params(kp)
    name_ids = jax.random.randint(kn, (B, SEQ), 0, VOCAB, dtype=jnp.int32)
    desc_ids = jax.random.randint(kd, (B, SEQ), 0, VOCAB, dtype=jnp.int32)
    category_name = jax.random.randint(kc, (B,), 0, N_CATEGORY, dtype=jnp.int32)
    brand_name = jax.random.randint(kb, (B,), 0, N_BRAND, dtype=jnp.int32)
    x_numeric = jax.random.uniform(kx, (B, NUM_DIM), jnp.float32)
    t = jax.random.uniform(kt, (B,), jnp.float32,
                           TARGET_RANGE[0], TARGET_RANGE[1])

    y, y_array, q_array = forward(params, name_ids, desc_ids,
                                  category_name, brand_name, x_numeric, t, ks)
    jax.block_until_ready((y, y_array, q_array))

    assert y.shape == (B, 1)
    assert y_array.shape == (B, MC_SAMPLES)
    assert q_array.shape == (B, MC_SAMPLES)

    # sanity check against the plain-JAX reference.  The kernel feeds bf16
    # operands to the MXU (per the perf review) while the reference runs f32
    # at HIGHEST precision, so the tolerance is loose; a structural/wiring bug
    # would be O(|energy|), far above this bound.
    ref_y, ref_ya = _reference_forward(params, name_ids, desc_ids,
                                       category_name, brand_name, x_numeric, t, ks)
    kern = jnp.concatenate([y, y_array], axis=1)
    ref = jnp.concatenate([ref_y, ref_ya], axis=1)
    assert bool(jnp.allclose(kern, ref, rtol=2e-2, atol=7.5e-1)), \
        float(jnp.max(jnp.abs(kern - ref)))

    print("KERNEL_OK")
</pallas_src>

<mosaic_0001>
module attributes {stable_mosaic.version = 11 : i64} {
  func.func @_ebm_fused_kernel(%arg0: i32, %arg1: memref<8x144xbf16, #tpu.memory_space<vmem>>, %arg2: memref<136x1xf32, #tpu.memory_space<vmem>>, %arg3: memref<272x64xbf16, #tpu.memory_space<vmem>>, %arg4: memref<4x64xf32, #tpu.memory_space<vmem>>, %arg5: memref<136x1xf32, #tpu.memory_space<vmem>>) attributes {dimension_semantics = [#tpu.dimension_semantics<parallel>], iteration_bounds = array<i64: 1>, scalar_prefetch = 0 : i64, scratch_operands = 0 : i64, tpu.core_type = #tpu.core_type<tc>, window_params = [{transform_indices = @transform_0, window_bounds = array<i64: 8, 144>}, {transform_indices = @transform_1, window_bounds = array<i64: 136, 1>}, {pipeline_mode = #tpu.pipeline_mode<synchronous>, transform_indices = @transform_2, window_bounds = array<i64: 272, 64>}, {pipeline_mode = #tpu.pipeline_mode<synchronous>, transform_indices = @transform_3, window_bounds = array<i64: 4, 64>}, {transform_indices = @transform_4, window_bounds = array<i64: 136, 1>}]} {
    %c0 = arith.constant 0 : index
    %c0_0 = arith.constant 0 : index
    %0 = vector.load %arg4[%c0, %c0_0] : memref<4x64xf32, #tpu.memory_space<vmem>>, vector<4x64xf32>
    %1 = vector.extract_strided_slice %0 {offsets = [0, 0], sizes = [1, 64], strides = [1, 1]} : vector<4x64xf32> to vector<1x64xf32>
    %2 = vector.extract_strided_slice %0 {offsets = [1, 0], sizes = [1, 64], strides = [1, 1]} : vector<4x64xf32> to vector<1x64xf32>
    %3 = vector.extract_strided_slice %0 {offsets = [2, 0], sizes = [1, 64], strides = [1, 1]} : vector<4x64xf32> to vector<1x64xf32>
    %4 = vector.extract_strided_slice %0 {offsets = [3, 0], sizes = [1, 64], strides = [1, 1]} : vector<4x64xf32> to vector<1x64xf32>
    %c0_1 = arith.constant 0 : index
    %c0_2 = arith.constant 0 : index
    %5 = vector.load %arg1[%c0_1, %c0_2] : memref<8x144xbf16, #tpu.memory_space<vmem>>, vector<8x144xbf16>
    %c0_3 = arith.constant 0 : index
    %c0_4 = arith.constant 0 : index
    %6 = vector.load %arg3[%c0_3, %c0_4] : memref<272x64xbf16, #tpu.memory_space<vmem>>, vector<144x64xbf16>
    %cst = arith.constant dense<0.000000e+00> : vector<8x64xf32>
    %7 = tpu.matmul %5, %6, %cst {dimension_numbers = #tpu.dot_dimension_numbers<[1], [0], [0], [1], [0, 0, 1, 1], [], []>} : vector<8x144xbf16>, vector<144x64xbf16>, vector<8x64xf32> -> vector<8x64xf32>
    %8 = tpu.iota {dimensions = array<i32: 0>} : vector<136x8xi32>
    %9 = tpu.iota {dimensions = array<i32: 1>} : vector<136x8xi32>
    %c17_i32 = arith.constant 17 : i32
    %10 = vector.broadcast %c17_i32 : i32 to vector<136x8xi32>
    %11 = arith.muli %9, %10 : vector<136x8xi32>
    %12 = arith.cmpi sge, %8, %11 : vector<136x8xi32>
    %c17_i32_5 = arith.constant 17 : i32
    %13 = vector.broadcast %c17_i32_5 : i32 to vector<136x8xi32>
    %14 = arith.addi %11, %13 : vector<136x8xi32>
    %15 = arith.cmpi slt, %8, %14 : vector<136x8xi32>
    %16 = arith.andi %12, %15 : vector<136x8xi1>
    %cst_6 = arith.constant 1.000000e+00 : f32
    %cst_7 = arith.constant 0.000000e+00 : f32
    %17 = vector.broadcast %cst_6 : f32 to vector<136x8xf32>
    %18 = vector.broadcast %cst_7 : f32 to vector<136x8xf32>
    %19 = arith.select %16, %17, %18 : vector<136x8xi1>, vector<136x8xf32>
    %20 = arith.truncf %19 : vector<136x8xf32> to vector<136x8xbf16>
    %21 = arith.truncf %7 : vector<8x64xf32> to vector<8x64xbf16>
    %cst_8 = arith.constant dense<0.000000e+00> : vector<136x64xf32>
    %22 = tpu.matmul %20, %21, %cst_8 {dimension_numbers = #tpu.dot_dimension_numbers<[1], [0], [0], [1], [0, 0, 1, 1], [], []>} : vector<136x8xbf16>, vector<8x64xbf16>, vector<136x64xf32> -> vector<136x64xf32>
    %c0_9 = arith.constant 0 : index
    %c0_10 = arith.constant 0 : index
    %23 = vector.load %arg2[%c0_9, %c0_10] : memref<136x1xf32, #tpu.memory_space<vmem>>, vector<136x1xf32>
    %24 = vector.broadcast %23 : vector<136x1xf32> to vector<136x64xf32>
    %25 = vector.broadcast %1 : vector<1x64xf32> to vector<136x64xf32>
    %26 = arith.mulf %24, %25 : vector<136x64xf32>
    %27 = arith.addf %22, %26 : vector<136x64xf32>
    %cst_11 = arith.constant 0.000000e+00 : f32
    %28 = vector.broadcast %cst_11 : f32 to vector<136x64xf32>
    %29 = arith.maximumf %27, %28 : vector<136x64xf32>
    %30 = arith.truncf %29 : vector<136x64xf32> to vector<136x64xbf16>
    %c144 = arith.constant 144 : index
    %c0_12 = arith.constant 0 : index
    %31 = vector.load %arg3[%c144, %c0_12] : memref<272x64xbf16, #tpu.memory_space<vmem>>, vector<64x64xbf16>
    %cst_13 = arith.constant dense<0.000000e+00> : vector<136x64xf32>
    %32 = tpu.matmul %30, %31, %cst_13 {dimension_numbers = #tpu.dot_dimension_numbers<[1], [0], [0], [1], [0, 0, 1, 1], [], []>} : vector<136x64xbf16>, vector<64x64xbf16>, vector<136x64xf32> -> vector<136x64xf32>
    %33 = vector.broadcast %2 : vector<1x64xf32> to vector<136x64xf32>
    %34 = arith.addf %32, %33 : vector<136x64xf32>
    %cst_14 = arith.constant 0.000000e+00 : f32
    %35 = vector.broadcast %cst_14 : f32 to vector<136x64xf32>
    %36 = arith.maximumf %34, %35 : vector<136x64xf32>
    %37 = arith.truncf %36 : vector<136x64xf32> to vector<136x64xbf16>
    %c208 = arith.constant 208 : index
    %c0_15 = arith.constant 0 : index
    %38 = vector.load %arg3[%c208, %c0_15] : memref<272x64xbf16, #tpu.memory_space<vmem>>, vector<64x64xbf16>
    %cst_16 = arith.constant dense<0.000000e+00> : vector<136x64xf32>
    %39 = tpu.matmul %37, %38, %cst_16 {dimension_numbers = #tpu.dot_dimension_numbers<[1], [0], [0], [1], [0, 0, 1, 1], [], []>} : vector<136x64xbf16>, vector<64x64xbf16>, vector<136x64xf32> -> vector<136x64xf32>
    %40 = vector.broadcast %3 : vector<1x64xf32> to vector<136x64xf32>
    %41 = arith.addf %39, %40 : vector<136x64xf32>
    %cst_17 = arith.constant 0.000000e+00 : f32
    %42 = vector.broadcast %cst_17 : f32 to vector<136x64xf32>
    %43 = arith.maximumf %41, %42 : vector<136x64xf32>
    %44 = vector.broadcast %4 : vector<1x64xf32> to vector<136x64xf32>
    %45 = arith.mulf %43, %44 : vector<136x64xf32>
    %cst_18 = arith.constant dense<0.000000e+00> : vector<136xf32>
    %46 = vector.multi_reduction <add>, %45, %cst_18 [1] : vector<136x64xf32> to vector<136xf32>
    %47 = vector.shape_cast %46 : vector<136xf32> to vector<136x1xf32>
    %c0_19 = arith.constant 0 : index
    %c0_20 = arith.constant 0 : index
    %48 = vector.load %arg5[%c0_19, %c0_20] : memref<136x1xf32, #tpu.memory_space<vmem>>, vector<136x1xf32>
    tpu.vector_store %arg5[%c0_19, %c0_20], %47 {strides = array<i32>} : memref<136x1xf32, #tpu.memory_space<vmem>>, vector<136x1xf32>,
    return
  }
  func.func @transform_0(%arg0: i32) -> (i32, i32) {
    %c0_i32 = arith.constant 0 : i32
    %c0_i32_0 = arith.constant 0 : i32
    return %arg0, %c0_i32 : i32, i32
  }
  func.func @transform_1(%arg0: i32) -> (i32, i32) {
    %c0_i32 = arith.constant 0 : i32
    %c0_i32_0 = arith.constant 0 : i32
    return %arg0, %c0_i32 : i32, i32
  }
  func.func @transform_2(%arg0: i32) -> (i32, i32) {
    %c0_i32 = arith.constant 0 : i32
    %c0_i32_0 = arith.constant 0 : i32
    %c0_i32_1 = arith.constant 0 : i32
    return %c0_i32, %c0_i32_0 : i32, i32
  }
  func.func @transform_3(%arg0: i32) -> (i32, i32) {
    %c0_i32 = arith.constant 0 : i32
    %c0_i32_0 = arith.constant 0 : i32
    %c0_i32_1 = arith.constant 0 : i32
    return %c0_i32, %c0_i32_0 : i32, i32
  }
  func.func @transform_4(%arg0: i32) -> (i32, i32) {
    %c0_i32 = arith.constant 0 : i32
    %c0_i32_0 = arith.constant 0 : i32
    return %arg0, %c0_i32 : i32, i32
  }
}

</mosaic_0001>

<bundles_post_ra>
// kernel: forward.1
= control target key start
LH: loop header
LB: loop body
LE: loop exit
PB: predicated region body
PF: predicated region fallthrough
CT: control target
= control target key end

     0   :  { %v947_v4 = vmov 0   ;;  %vm98_vm0 = vcmask 130048   ;;  %v128_v22 = vlaneseq  ;;  %vm376_vm13 = vcmask 1043456   ;;  %s1358_s2 = inlined_call_operand.vmem [shape: bf16[272,64], index: 2, kind: input, shape index: {}]   ;;  %s1359_s0 = inlined_call_operand.vmem [shape: bf16[8,144], index: 0, kind: input, shape index: {}]   ;;  %s1360_s1 = inlined_call_operand.vmem [shape: f32[136,1], index: 1, kind: input, shape index: {}]   ;;  %s1361_s3 = inlined_call_operand.vmem [shape: f32[4,64], index: 3, kind: input, shape index: {}]   ;;  %s1362_s4 = inlined_call_operand.vmem [shape: f32[136,1], index: 4, kind: output, shape index: {}]  }
   0x1   :  { %v923_v0 = vld [vmem:[%s1358_s2 + $0x38] sm:$0xff]  ;;  %v922_v1 = vld [vmem:[%s1358_s2 + $0x30] sm:$0xff]  ;;  %v924_v2 = vld [vmem:[%s1358_s2 + $0x40] sm:$0xff]  ;;  %944 = vset.pattern.permute.xlu0 %v947_v4  ;;  %945 = vset.pattern.permute.xlu1 %v947_v4  ;;  %v948_v39 = vmov 0.0   ;;  %vm348_vm14 = vcmask 64512  }
   0x2   :  { %102 = vmatpush.bf16.msra.mxu0 %v923_v0  ;;  %v19_v3 = vld [vmem:[%s1359_s0] sm:$0xff]  ;;  %v230_v6 = vld [vmem:[%s1360_s1 + $0x10] sm:$0xff]  ;;  %946 = vset.pattern.permute.xlu2 %v947_v4  ;;  %v921_v8 = vld [vmem:[%s1358_s2 + $0x28] sm:$0xff]  ;;  %v147_v25 = vand.u32 127, %v128_v22  ;;  %v1033_v29 = vshrl.u32 %v128_v22, 7 }
   0x3   :  { %v40_v5 = vunpack.c.h.b16 %v19_v3  ;;  %122 = vmatpush.bf16.msra.mxu1 %v924_v2  ;;  %257 = vperm.xlu0 %944, %v230_v6   ;;  %v231_v9 = vld [vmem:[%s1360_s1 + $0x18] sm:$0xff]  ;;  %v920_v10 = vld [vmem:[%s1358_s2 + $0x20] sm:$0xff]  ;;  %v918_v12 = vld [vmem:[%s1358_s2 + $0x10] sm:$0xff]  ;;  %v39_v14 = vunpack.c.l.b16 %v19_v3 }
   0x4   :  { %v919_v11 = vld [vmem:[%s1358_s2 + $0x18] sm:$0xff]  ;;  %v917_v13 = vld [vmem:[%s1358_s2 + $0x8] sm:$0xff]  ;;  %v916_v15 = vld [vmem:[%s1358_s2] sm:$0xff]  ;;  %v1031_v28 = vmul.u32 17, %v147_v25  ;;  %v130_v32 = vadd.s32 8, %v1033_v29  ;;  %v131_v33 = vadd.s32 16, %v1033_v29 }
   0x5   :  { %v42_v7 = vpack.c.b16 %v40_v5, %v40_v5  ;;  %v41_v16 = vpack.c.b16 %v39_v14, %v39_v14  ;;  %v232_v17 = vld [vmem:[%s1360_s1 + $0x20] sm:$0xff]  ;;  %v233_v19 = vld [vmem:[%s1360_s1 + $0x28] sm:$0xff]  ;;  %v239_v21 = vld [vmem:[%s1360_s1 + $0x58] sm:$0xff]  ;;  %v132_v34 = vadd.s32 24, %v1033_v29  ;;  %v133_v48 = vadd.s32 32, %v1033_v29 }
   0x6   :  { %103 = vmatpush.bf16.msra.mxu0 %v922_v1  ;;  %v236_v18 = vld [vmem:[%s1360_s1 + $0x40] sm:$0xff]  ;;  %267 = vperm.xlu1 %945, %v232_v17   ;;  %v237_v23 = vld [vmem:[%s1360_s1 + $0x48] sm:$0xff]  ;;  %v243_v30 = vld [vmem:[%s1360_s1 + $0x78] sm:$0xff]  ;;  %v1039_v31 = vadd.s32 17, %v1031_v28  ;;  %vm149_vm1 = vcmp.ge.s32.totalorder %v1033_v29, %v1031_v28  ;;  %vm150_vm3 = vcmp.ge.s32.totalorder %v130_v32, %v1031_v28  ;;  %vm151_vm5 = vcmp.ge.s32.totalorder %v131_v33, %v1031_v28 }
   0x7   :  { %856 = vmatmul.msk.bf16.vlgmr.msra.gmra.mxu1 %vm98_vm0, %v42_v7  ;;  %v228_v24 = vld [vmem:[%s1360_s1] sm:$0xff]  ;;  %v229_v35 = vld [vmem:[%s1360_s1 + $0x8] sm:$0xff]  ;;  %vm152_vm8 = vcmp.ge.s32.totalorder %v132_v34, %v1031_v28  ;;  %v134_v50 = vadd.s32 40, %v1033_v29  ;;  %v234_v51 = vld [vmem:[%s1360_s1 + $0x30] sm:$0xff]  ;;  %vm153_vm15 = vcmp.ge.s32.totalorder %v133_v48, %v1031_v28  ;;  %v135_v56 = vadd.s32 48, %v1033_v29 }
   0x8   :  { %v240_v27 = vld [vmem:[%s1360_s1 + $0x60] sm:$0xff]  ;;  %vm167_vm2 = vcmp.lt.s32.totalorder %v1033_v29, %v1039_v31  ;;  %vm168_vm4 = vcmp.lt.s32.totalorder %v130_v32, %v1039_v31  ;;  %vm169_vm6 = vcmp.lt.s32.totalorder %v131_v33, %v1039_v31  ;;  %vm170_vm9 = vcmp.lt.s32.totalorder %v132_v34, %v1039_v31  ;;  %277 = vperm.xlu2 %946, %v234_v51   ;;  %v235_v52 = vld [vmem:[%s1360_s1 + $0x38] sm:$0xff]  ;;  %v238_v58 = vld [vmem:[%s1360_s1 + $0x50] sm:$0xff] }
   0x9   :  { %vm184_vm7 = vmand %vm149_vm1, %vm167_vm2  ;;  %v244_v36 = vld [vmem:[%s1360_s1 + $0x80] sm:$0xff]  ;;  %vm171_vm0 = vcmp.lt.s32.totalorder %v133_v48, %v1039_v31  ;;  %vm154_vm1 = vcmp.ge.s32.totalorder %v134_v50, %v1031_v28  ;;  %vm172_vm2 = vcmp.lt.s32.totalorder %v134_v50, %v1039_v31  ;;  %v136_v57 = vadd.s32 56, %v1033_v29  ;;  %v241_v59 = vld [vmem:[%s1360_s1 + $0x68] sm:$0xff] }
   0xa   :  { %104 = vmatpush.bf16.msra.mxu0 %v921_v8  ;;  %vm185_vm10 = vmand %vm150_vm3, %vm168_vm4  ;;  %v201_v40 = vsel %vm184_vm7, 1.0, %v948_v39  ;;  %v137_v63 = vadd.s32 64, %v1033_v29  ;;  %v138_v0 = vadd.s32 72, %v1033_v29  ;;  %v242_v1 = vld [vmem:[%s1360_s1 + $0x70] sm:$0xff]  ;;  %v139_v5 = vadd.s32 80, %v1033_v29 }
   0xb   :  { %262 = vperm.xlu0 %944, %v231_v9   ;;  %vm186_vm11 = vmand %vm151_vm5, %vm169_vm6  ;;  %v202_v41 = vsel %vm185_vm10, 1.0, %v948_v39  ;;  %vm155_vm5 = vcmp.ge.s32.totalorder %v135_v56, %v1031_v28  ;;  %vm173_vm6 = vcmp.lt.s32.totalorder %v135_v56, %v1039_v31  ;;  %vm156_vm7 = vcmp.ge.s32.totalorder %v136_v57, %v1031_v28 }
   0xc   :  { %vm187_vm12 = vmand %vm152_vm8, %vm170_vm9  ;;  %v203_v42 = vsel %vm186_vm11, 1.0, %v948_v39  ;;  %v218_v46 = vpack.c.bf16 %v202_v41, %v201_v40  ;;  %vm174_vm8 = vcmp.lt.s32.totalorder %v136_v57, %v1039_v31  ;;  %vm157_vm11 = vcmp.ge.s32.totalorder %v137_v63, %v1031_v28 }
   0xd   :  { %v204_v43 = vsel %vm187_vm12, 1.0, %v948_v39  ;;  %vm188_vm3 = vmand %vm153_vm15, %vm171_vm0  ;;  %vm175_vm12 = vcmp.lt.s32.totalorder %v137_v63, %v1039_v31  ;;  %vm176_vm15 = vcmp.lt.s32.totalorder %v138_v0, %v1039_v31  ;;  %v140_v6 = vadd.s32 88, %v1033_v29 }
   0xe   :  { %105 = vmatpush.bf16.msra.mxu0 %v920_v10  ;;  %272 = vperm.xlu1 %945, %v233_v19   ;;  %v219_v47 = vpack.c.bf16 %v204_v43, %v203_v42  ;;  %vm189_vm4 = vmand %vm154_vm1, %vm172_vm2  ;;  %v205_v53 = vsel %vm188_vm3, 1.0, %v948_v39  ;;  %vm159_vm2 = vcmp.ge.s32.totalorder %v139_v5, %v1031_v28  ;;  %vm177_vm3 = vcmp.lt.s32.totalorder %v139_v5, %v1039_v31 }
   0xf   :  { %v206_v54 = vsel %vm189_vm4, 1.0, %v948_v39  ;;  %vm190_vm9 = vmand %vm155_vm5, %vm173_vm6  ;;  %vm160_vm4 = vcmp.ge.s32.totalorder %v140_v6, %v1031_v28  ;;  %vm178_vm5 = vcmp.lt.s32.totalorder %v140_v6, %v1039_v31  ;;  %v141_v10 = vadd.s32 96, %v1033_v29 }
  0x10   :  { %282 = vperm.xlu2 %946, %v235_v52   ;;  %v220_v55 = vpack.c.bf16 %v206_v54, %v205_v53  ;;  %vm191_vm10 = vmand %vm156_vm7, %vm174_vm8  ;;  %v207_v60 = vsel %vm190_vm9, 1.0, %v948_v39 }
  0x11   :  { %v208_v61 = vsel %vm191_vm10, 1.0, %v948_v39  ;;  %vm192_vm0 = vmand %vm157_vm11, %vm175_vm12  ;;  %vm161_vm8 = vcmp.ge.s32.totalorder %v141_v10, %v1031_v28  ;;  %vm179_vm9 = vcmp.lt.s32.totalorder %v141_v10, %v1039_v31 }
  0x12   :  { %106 = vmatpush.bf16.msra.mxu0 %v919_v11  ;;  %v221_v62 = vpack.c.bf16 %v208_v61, %v207_v60  ;;  %v209_v2 = vsel %vm192_vm0, 1.0, %v948_v39  ;;  %vm194_vm6 = vmand %vm159_vm2, %vm177_vm3  ;;  %v142_v11 = vadd.s32 104, %v1033_v29 }
  0x13   :  { %287 = vperm.xlu0 %944, %v236_v18   ;;  %vm195_vm7 = vmand %vm160_vm4, %vm178_vm5  ;;  %v211_v7 = vsel %vm194_vm6, 1.0, %v948_v39 }
  0x14   :  { %v212_v8 = vsel %vm195_vm7, 1.0, %v948_v39  ;;  %vm162_vm10 = vcmp.ge.s32.totalorder %v142_v11, %v1031_v28  ;;  %vm180_vm11 = vcmp.lt.s32.totalorder %v142_v11, %v1039_v31  ;;  %vm196_vm12 = vmand %vm161_vm8, %vm179_vm9  ;;  %vm798_vm8 = vcmask 7168  }
  0x15   :  { %v223_v9 = vpack.c.bf16 %v212_v8, %v211_v7 }
  0x16   :  { %107 = vmatpush.bf16.msra.mxu0 %v918_v12  ;;  %292 = vperm.xlu1 %945, %v237_v23   ;;  %v213_v12 = vsel %vm196_vm12, 1.0, %v948_v39  ;;  %v145_v23 = vadd.s32 128, %v1033_v29 }
  0x18   :  { %297 = vperm.xlu2 %946, %v238_v58   ;;  %vm165_vm5 = vcmp.ge.s32.totalorder %v145_v23, %v1031_v28  ;;  %vm183_vm6 = vcmp.lt.s32.totalorder %v145_v23, %v1039_v31 }
  0x19   :  { %vm200_vm7 = vmand %vm165_vm5, %vm183_vm6 }
  0x1a   :  { %108 = vmatpush.bf16.msra.mxu0 %v917_v13 }
  0x1b   :  { %302 = vperm.xlu0 %944, %v239_v21   ;;  %v928_v21 = vld [vmem:[%s1358_s2 + $0x60] sm:$0xff] }
  0x1c   :  { %934 = vmatpush.bf16.msra.mxu3 %v928_v21 }
  0x1e   :  { %109 = vmatpush.bf16.msra.mxu0 %v916_v15  ;;  %307 = vperm.xlu1 %945, %v240_v27   ;;  %v143_v15 = vadd.s32 112, %v1033_v29  ;;  %v926_v27 = vld [vmem:[%s1358_s2 + $0x50] sm:$0xff] }
  0x20   :  { %312 = vperm.xlu2 %946, %v241_v59   ;;  %vm181_vm0 = vcmp.lt.s32.totalorder %v143_v15, %v1039_v31 }
  0x21   :  { %110 = vmatmul.bf16.vlgmr.msra.gmra.mxu0 %v41_v16  ;;  %v144_v16 = vadd.s32 120, %v1033_v29  ;;  %v925_v29 = vld [vmem:[%s1358_s2 + $0x48] sm:$0xff] }
  0x23   :  { %247 = vperm.xlu0 %944, %v228_v24   ;;  %vm182_vm2 = vcmp.lt.s32.totalorder %v144_v16, %v1039_v31  ;;  %v927_v24 = vld [vmem:[%s1358_s2 + $0x58] sm:$0xff] }
  0x24   :  { %935 = vmatpush.bf16.msra.mxu3 %v927_v24 }
  0x26   :  { %252 = vperm.xlu1 %945, %v229_v35   ;;  %v1159_v35 = vld [vmem:[%s1361_s3] sm:$0xf] }
  0x28   :  { %317 = vperm.xlu2 %946, %v242_v1   ;;  %936 = vmatpush.bf16.msra.mxu3 %v926_v27 }
  0x2b   :  { %322 = vperm.xlu0 %944, %v243_v30   ;;  %v217_v30 = vsel %vm200_vm7, 1.0, %v948_v39 }
  0x2c   :  { %937 = vmatpush.bf16.msra.mxu3 %v925_v29 }
  0x2e   :  { %327 = vperm.xlu1 %945, %v244_v36   ;;  %v1162_v36 = vperm.slane %v1159_v35, 0 }
  0x62   :  { %v278_v1 = vpop.permute.xlu2 %277 }
  0x6a   :  { %v283_v5 = vpop.permute.xlu2 %282 }
  0x6b   :  { %v338_v6 = vmul.f32 %v1162_v36, %v283_v5 }
  0x72   :  { %v298_v23 = vpop.permute.xlu2 %297 }
  0x75   :  { %v258_v17 = vpop.permute.xlu0 %257 }
  0x78   :  { %v268_v18 = vpop.permute.xlu1 %267 }
  0x79   :  { %v335_v58 = vmul.f32 %v1162_v36, %v268_v18 }
  0x7d   :  { %v263_v25 = vpop.permute.xlu0 %262 }
  0x84   :  { %v124_v20 = vpop.f32.mrf.mxu1 }
  0x85   :  { %v288_v32 = vpop.permute.xlu0 %287 }
  0x8c   :  { %v126_v26 = vpop.f32.mrf.mxu1 }
  0x8d   :  { %v273_v26 = vpop.permute.xlu1 %272  ;;  %v1152_v31 = vpop.permute.xlu0 %302 }
  0x8e   :  { %v336_v59 = vmul.f32 %v1162_v36, %v273_v26 }
  0x95   :  { %v293_v33 = vpop.permute.xlu1 %292 }
  0x9d   :  { %v1154_v34 = vpop.permute.xlu1 %307 }
  0x9e   :  { %v111_v37 = vpop.f32.mrf.mxu0 }
  0x9f   :  { %v125_v38 = vadd.f32 %v124_v20, %v111_v37 }
  0xa1   :  { %v227_v44 = vpack.c.bf16 %v125_v38, %v125_v38  ;;  %v248_v38 = vpop.permute.xlu0 %247 }
  0xa2   :  { %v331_v40 = vmul.f32 %v1162_v36, %v248_v38  ;;  %v313_v38 = vpop.permute.xlu2 %312 }
  0xa3   :  { %v378_v45 = vsel %vm376_vm13, %v227_v44, 0  ;;  %vm158_vm13 = vcmp.ge.s32.totalorder %v138_v0, %v1031_v28 }
  0xa4   :  { %387 = vmatpush.bf16.msrb.mxu0 %v378_v45  ;;  %933 = vmatpush.bf16.msra.mxu2 %v378_v45  ;;  %vm193_vm1 = vmand %vm158_vm13, %vm176_vm15  ;;  %vm163_vm15 = vcmp.ge.s32.totalorder %v143_v15, %v1031_v28  ;;  %v333_v45 = vmul.f32 %v1162_v36, %v258_v17  ;;  %v340_v15 = vmul.f32 %v1162_v36, %v293_v33 }
  0xa5   :  { %v210_v3 = vsel %vm193_vm1, 1.0, %v948_v39  ;;  %vm197_vm13 = vmand %vm162_vm10, %vm180_vm11  ;;  %vm164_vm1 = vcmp.ge.s32.totalorder %v144_v16, %v1031_v28  ;;  %v226_v28 = vpack.c.bf16 %v217_v30, %v217_v30 }
  0xa6   :  { %v113_v49 = vpop.f32.mrf.mxu0  ;;  %v222_v4 = vpack.c.bf16 %v210_v3, %v209_v2  ;;  %v214_v13 = vsel %vm197_vm13, 1.0, %v948_v39  ;;  %vm198_vm3 = vmand %vm163_vm15, %vm181_vm0 }
  0xa7   :  { %857 = vmatmul.msk.bf16.vlgmr.msrb.gmra.mxu0 %vm348_vm14, %v218_v46  ;;  %858 = vmatmul.msk.bf16.vlgmr.msra.gmra.mxu2 %vm348_vm14, %v219_v47  ;;  %v224_v14 = vpack.c.bf16 %v214_v13, %v213_v12  ;;  %vm199_vm4 = vmand %vm164_vm1, %vm182_vm2  ;;  %v215_v19 = vsel %vm198_vm3, 1.0, %v948_v39  ;;  %v334_v49 = vmul.f32 %v1162_v36, %v263_v25  ;;  %v342_v25 = vmul.f32 %v1162_v36, %v1152_v31 }
  0xa8   :  { %v216_v20 = vsel %vm199_vm4, 1.0, %v948_v39  ;;  %524 = vmatpush.bf16.msra.mxu0 %v928_v21  ;;  %v253_v39 = vpop.permute.xlu1 %252 }
  0xa9   :  { %v225_v22 = vpack.c.bf16 %v216_v20, %v215_v19  ;;  %v332_v41 = vmul.f32 %v1162_v36, %v253_v39  ;;  %v344_v39 = vmul.f32 %v1162_v36, %v313_v38 }
  0xac   :  { %525 = vmatpush.bf16.msra.mxu0 %v927_v24  ;;  %v341_v24 = vmul.f32 %v1162_v36, %v298_v23 }
  0xb0   :  { %526 = vmatpush.bf16.msra.mxu0 %v926_v27 }
  0xb4   :  { %527 = vmatpush.bf16.msra.mxu0 %v925_v29 }
  0xb7   :  { %859 = vmatmul.msk.bf16.gmra.mxu2 %vm348_vm14, %v220_v55 }
  0xc7   :  { %860 = vmatmul.msk.bf16.gmra.mxu2 %vm348_vm14, %v221_v62 }
  0xd7   :  { %861 = vmatmul.msk.bf16.gmra.mxu2 %vm348_vm14, %v222_v4  ;;  %v337_v4 = vmul.f32 %v1162_v36, %v278_v1 }
  0xe7   :  { %862 = vmatmul.msk.bf16.gmra.mxu2 %vm348_vm14, %v223_v9 }
  0xf7   :  { %863 = vmatmul.msk.bf16.gmra.mxu2 %vm348_vm14, %v224_v14  ;;  %v339_v14 = vmul.f32 %v1162_v36, %v288_v32 }
 0x107   :  { %864 = vmatmul.msk.bf16.gmra.mxu2 %vm348_vm14, %v225_v22 }
 0x117   :  { %865 = vmatmul.msk.bf16.gmra.mxu2 %vm348_vm14, %v226_v28  ;;  %vm492_vm14 = vcmask 523264  }
 0x124   :  { %v389_v37 = vpop.f32.mrf.mxu0 }
 0x125   :  { %v390_v43 = vadd.f32 %v389_v37, %v331_v40  ;;  %v343_v37 = vmul.f32 %v1162_v36, %v1154_v34 }
 0x127   :  { %v433_v47 = vmax.f32 %v390_v43, 0.0 }
 0x12a   :  { %v394_v42 = vpop.f32.mrf.mxu2 }
 0x12b   :  { %v395_v50 = vadd.f32 %v394_v42, %v333_v45 }
 0x12c   :  { %v391_v44 = vpop.f32.mrf.mxu0 }
 0x12d   :  { %v392_v46 = vadd.f32 %v391_v44, %v332_v41  ;;  %v435_v54 = vmax.f32 %v395_v50, 0.0 }
 0x12f   :  { %v434_v48 = vmax.f32 %v392_v46, 0.0  ;;  %v318_v46 = vpop.permute.xlu2 %317 }
 0x130   :  { %v345_v34 = vmul.f32 %v1162_v36, %v318_v46 }
 0x131   :  { %v450_v51 = vpack.c.bf16 %v434_v48, %v433_v47  ;;  %v323_v47 = vpop.permute.xlu0 %322  ;;  %v932_v48 = vld [vmem:[%s1358_s2 + $0x80] sm:$0xff] }
 0x132   :  { %v396_v52 = vpop.f32.mrf.mxu2  ;;  %663 = vmatpush.bf16.msrb.mxu0 %v932_v48  ;;  %938 = vmatpush.bf16.msrb.mxu1 %v932_v48 }
 0x133   :  { %v397_v53 = vadd.f32 %v396_v52, %v334_v49  ;;  %882 = vmatmul.msk.bf16.vlgmr.msra.gmra.mxu0 %vm492_vm14, %v450_v51  ;;  %v346_v49 = vmul.f32 %v1162_v36, %v323_v47  ;;  %v931_v52 = vld [vmem:[%s1358_s2 + $0x78] sm:$0xff] }
 0x135   :  { %v436_v55 = vmax.f32 %v397_v53, 0.0 }
 0x136   :  { %664 = vmatpush.bf16.msrb.mxu0 %v931_v52  ;;  %939 = vmatpush.bf16.msrb.mxu1 %v931_v52 }
 0x137   :  { %v451_v56 = vpack.c.bf16 %v436_v55, %v435_v54 }
 0x139   :  { %883 = vmatmul.msk.bf16.vlgmr.msra.gmra.mxu3 %vm492_vm14, %v451_v56  ;;  %v930_v56 = vld [vmem:[%s1358_s2 + $0x70] sm:$0xff] }
 0x13a   :  { %v399_v57 = vpop.f32.mrf.mxu2  ;;  %665 = vmatpush.bf16.msrb.mxu0 %v930_v56  ;;  %940 = vmatpush.bf16.msrb.mxu1 %v930_v56 }
 0x13b   :  { %v400_v60 = vadd.f32 %v399_v57, %v335_v58  ;;  %v328_v58 = vpop.permute.xlu1 %327 }
 0x13d   :  { %v437_v63 = vmax.f32 %v400_v60, 0.0  ;;  %v929_v60 = vld [vmem:[%s1358_s2 + $0x68] sm:$0xff] }
 0x13e   :  { %666 = vmatpush.bf16.msrb.mxu0 %v929_v60  ;;  %941 = vmatpush.bf16.msrb.mxu1 %v929_v60 }
 0x142   :  { %v401_v61 = vpop.f32.mrf.mxu2 }
 0x143   :  { %v402_v62 = vadd.f32 %v401_v61, %v336_v59  ;;  %v347_v61 = vmul.f32 %v1162_v36, %v328_v58 }
 0x145   :  { %v438_v0 = vmax.f32 %v402_v62, 0.0 }
 0x147   :  { %v452_v2 = vpack.c.bf16 %v438_v0, %v437_v63 }
 0x149   :  { %884 = vmatmul.msk.bf16.gmra.mxu3 %vm492_vm14, %v452_v2 }
 0x14a   :  { %v404_v3 = vpop.f32.mrf.mxu2 }
 0x14b   :  { %v405_v7 = vadd.f32 %v404_v3, %v337_v4  ;;  %v1205_v3 = vperm.slane %v1159_v35, 1 }
 0x14d   :  { %v439_v10 = vmax.f32 %v405_v7, 0.0 }
 0x152   :  { %v406_v8 = vpop.f32.mrf.mxu2 }
 0x153   :  { %v407_v9 = vadd.f32 %v406_v8, %v338_v6 }
 0x155   :  { %v440_v11 = vmax.f32 %v407_v9, 0.0 }
 0x157   :  { %v453_v12 = vpack.c.bf16 %v440_v11, %v439_v10 }
 0x159   :  { %885 = vmatmul.msk.bf16.gmra.mxu3 %vm492_vm14, %v453_v12 }
 0x15a   :  { %v409_v13 = vpop.f32.mrf.mxu2 }
 0x15b   :  { %v410_v16 = vadd.f32 %v409_v13, %v339_v14 }
 0x15d   :  { %v441_v19 = vmax.f32 %v410_v16, 0.0 }
 0x162   :  { %v411_v17 = vpop.f32.mrf.mxu2 }
 0x163   :  { %v412_v18 = vadd.f32 %v411_v17, %v340_v15 }
 0x165   :  { %v442_v20 = vmax.f32 %v412_v18, 0.0 }
 0x167   :  { %v454_v21 = vpack.c.bf16 %v442_v20, %v441_v19 }
 0x169   :  { %886 = vmatmul.msk.bf16.gmra.mxu3 %vm492_vm14, %v454_v21 }
 0x16a   :  { %v414_v22 = vpop.f32.mrf.mxu2 }
 0x16b   :  { %v415_v26 = vadd.f32 %v414_v22, %v341_v24 }
 0x16d   :  { %v443_v30 = vmax.f32 %v415_v26, 0.0 }
 0x172   :  { %v416_v27 = vpop.f32.mrf.mxu2 }
 0x173   :  { %v417_v29 = vadd.f32 %v416_v27, %v342_v25 }
 0x175   :  { %v444_v32 = vmax.f32 %v417_v29, 0.0 }
 0x177   :  { %v455_v33 = vpack.c.bf16 %v444_v32, %v443_v30 }
 0x179   :  { %887 = vmatmul.msk.bf16.gmra.mxu3 %vm492_vm14, %v455_v33 }
 0x17a   :  { %v419_v28 = vpop.f32.mrf.mxu2 }
 0x17b   :  { %v420_v40 = vadd.f32 %v419_v28, %v343_v37 }
 0x17d   :  { %v445_v43 = vmax.f32 %v420_v40, 0.0 }
 0x182   :  { %v421_v41 = vpop.f32.mrf.mxu2 }
 0x183   :  { %v422_v42 = vadd.f32 %v421_v41, %v344_v39 }
 0x185   :  { %v446_v31 = vmax.f32 %v422_v42, 0.0 }
 0x187   :  { %v456_v44 = vpack.c.bf16 %v446_v31, %v445_v43 }
 0x189   :  { %888 = vmatmul.msk.bf16.gmra.mxu3 %vm492_vm14, %v456_v44 }
 0x18a   :  { %v424_v45 = vpop.f32.mrf.mxu2 }
 0x18b   :  { %v425_v50 = vadd.f32 %v424_v45, %v345_v34 }
 0x18d   :  { %v447_v54 = vmax.f32 %v425_v50, 0.0 }
 0x192   :  { %v426_v51 = vpop.f32.mrf.mxu2 }
 0x193   :  { %v427_v53 = vadd.f32 %v426_v51, %v346_v49 }
 0x195   :  { %v448_v55 = vmax.f32 %v427_v53, 0.0 }
 0x197   :  { %v457_v57 = vpack.c.bf16 %v448_v55, %v447_v54 }
 0x199   :  { %889 = vmatmul.msk.bf16.gmra.mxu3 %vm492_vm14, %v457_v57 }
 0x19a   :  { %v429_v59 = vpop.f32.mrf.mxu2 }
 0x19b   :  { %v430_v62 = vadd.f32 %v429_v59, %v347_v61 }
 0x19d   :  { %v449_v0 = vmax.f32 %v430_v62, 0.0 }
 0x19f   :  { %v458_v1 = vpack.c.bf16 %v449_v0, %v449_v0 }
 0x1a2   :  { %v431_v63 = vpop.f32.mrf.mxu2 }
 0x1a9   :  { %890 = vmatmul.msk.bf16.gmra.mxu3 %vm492_vm14, %v458_v1  ;;  %v1233_v1 = vperm.slane %v1159_v35, 2 }
 0x1b0   :  { %v529_v2 = vpop.f32.mrf.mxu0 }
 0x1b1   :  { %v530_v4 = vadd.f32 %v529_v2, %v1205_v3 }
 0x1b3   :  { %v573_v7 = vmax.f32 %v530_v4, 0.0 }
 0x1b8   :  { %v531_v5 = vpop.f32.mrf.mxu0 }
 0x1b9   :  { %v532_v6 = vadd.f32 %v531_v5, %v1205_v3  ;;  %v1238_v5 = vperm.slane %v1159_v35, 3 }
 0x1bb   :  { %v574_v8 = vmax.f32 %v532_v6, 0.0 }
 0x1bc   :  { %v534_v9 = vpop.f32.mrf.mxu3 }
 0x1bd   :  { %v590_v10 = vpack.c.bf16 %v574_v8, %v573_v7  ;;  %v535_v12 = vadd.f32 %v534_v9, %v1205_v3 }
 0x1bf   :  { %907 = vmatmul.msk.bf16.vlgmr.msrb.gmra.mxu0 %vm492_vm14, %v590_v10  ;;  %v575_v14 = vmax.f32 %v535_v12, 0.0 }
 0x1c4   :  { %v536_v36 = vpop.f32.mrf.mxu3 }
 0x1c5   :  { %v537_v11 = vadd.f32 %v536_v36, %v1205_v3 }
 0x1c7   :  { %v576_v13 = vmax.f32 %v537_v11, 0.0 }
 0x1c9   :  { %v591_v16 = vpack.c.bf16 %v576_v13, %v575_v14 }
 0x1cc   :  { %v539_v15 = vpop.f32.mrf.mxu3 }
 0x1cd   :  { %v540_v17 = vadd.f32 %v539_v15, %v1205_v3 }
 0x1cf   :  { %908 = vmatmul.msk.bf16.gmra.mxu0 %vm492_vm14, %v591_v16  ;;  %v577_v20 = vmax.f32 %v540_v17, 0.0 }
 0x1d4   :  { %v541_v18 = vpop.f32.mrf.mxu3 }
 0x1d5   :  { %v542_v19 = vadd.f32 %v541_v18, %v1205_v3 }
 0x1d7   :  { %v578_v21 = vmax.f32 %v542_v19, 0.0 }
 0x1d9   :  { %v592_v22 = vpack.c.bf16 %v578_v21, %v577_v20 }
 0x1db   :  { %909 = vmatmul.msk.bf16.vlgmr.msrb.gmra.mxu1 %vm492_vm14, %v592_v22 }
 0x1dc   :  { %v544_v23 = vpop.f32.mrf.mxu3 }
 0x1dd   :  { %v545_v24 = vadd.f32 %v544_v23, %v1205_v3 }
 0x1df   :  { %v579_v27 = vmax.f32 %v545_v24, 0.0 }
 0x1e4   :  { %v546_v25 = vpop.f32.mrf.mxu3 }
 0x1e5   :  { %v547_v26 = vadd.f32 %v546_v25, %v1205_v3 }
 0x1e7   :  { %v580_v29 = vmax.f32 %v547_v26, 0.0 }
 0x1e9   :  { %v593_v30 = vpack.c.bf16 %v580_v29, %v579_v27 }
 0x1eb   :  { %910 = vmatmul.msk.bf16.gmra.mxu1 %vm492_vm14, %v593_v30 }
 0x1ec   :  { %v549_v32 = vpop.f32.mrf.mxu3 }
 0x1ed   :  { %v550_v33 = vadd.f32 %v549_v32, %v1205_v3 }
 0x1ef   :  { %v581_v38 = vmax.f32 %v550_v33, 0.0 }
 0x1f4   :  { %v551_v28 = vpop.f32.mrf.mxu3 }
 0x1f5   :  { %v552_v37 = vadd.f32 %v551_v28, %v1205_v3 }
 0x1f7   :  { %v582_v39 = vmax.f32 %v552_v37, 0.0 }
 0x1f9   :  { %v594_v40 = vpack.c.bf16 %v582_v39, %v581_v38 }
 0x1fb   :  { %911 = vmatmul.msk.bf16.gmra.mxu1 %vm492_vm14, %v594_v40 }
 0x1fc   :  { %v554_v41 = vpop.f32.mrf.mxu3 }
 0x1fd   :  { %v555_v42 = vadd.f32 %v554_v41, %v1205_v3 }
 0x1ff   :  { %v583_v44 = vmax.f32 %v555_v42, 0.0 }
 0x204   :  { %v556_v43 = vpop.f32.mrf.mxu3 }
 0x205   :  { %v557_v31 = vadd.f32 %v556_v43, %v1205_v3 }
 0x207   :  { %v584_v45 = vmax.f32 %v557_v31, 0.0 }
 0x209   :  { %v595_v46 = vpack.c.bf16 %v584_v45, %v583_v44 }
 0x20b   :  { %912 = vmatmul.msk.bf16.gmra.mxu1 %vm492_vm14, %v595_v46 }
 0x20c   :  { %v559_v47 = vpop.f32.mrf.mxu3 }
 0x20d   :  { %v560_v48 = vadd.f32 %v559_v47, %v1205_v3 }
 0x20f   :  { %v585_v50 = vmax.f32 %v560_v48, 0.0 }
 0x214   :  { %v561_v34 = vpop.f32.mrf.mxu3 }
 0x215   :  { %v562_v49 = vadd.f32 %v561_v34, %v1205_v3 }
 0x217   :  { %v586_v51 = vmax.f32 %v562_v49, 0.0 }
 0x219   :  { %v596_v52 = vpack.c.bf16 %v586_v51, %v585_v50 }
 0x21b   :  { %913 = vmatmul.msk.bf16.gmra.mxu1 %vm492_vm14, %v596_v52 }
 0x21c   :  { %v564_v53 = vpop.f32.mrf.mxu3 }
 0x21d   :  { %v565_v54 = vadd.f32 %v564_v53, %v1205_v3 }
 0x21f   :  { %v587_v57 = vmax.f32 %v565_v54, 0.0 }
 0x224   :  { %v566_v55 = vpop.f32.mrf.mxu3 }
 0x225   :  { %v567_v56 = vadd.f32 %v566_v55, %v1205_v3 }
 0x227   :  { %v588_v58 = vmax.f32 %v567_v56, 0.0 }
 0x229   :  { %v597_v59 = vpack.c.bf16 %v588_v58, %v587_v57 }
 0x22b   :  { %914 = vmatmul.msk.bf16.gmra.mxu1 %vm492_vm14, %v597_v59 }
 0x22c   :  { %v569_v60 = vpop.f32.mrf.mxu3 }
 0x22d   :  { %v570_v61 = vadd.f32 %v569_v60, %v1205_v3 }
 0x22f   :  { %v589_v63 = vmax.f32 %v570_v61, 0.0 }
 0x231   :  { %v598_v0 = vpack.c.bf16 %v589_v63, %v589_v63 }
 0x234   :  { %v571_v62 = vpop.f32.mrf.mxu3 }
 0x23b   :  { %915 = vmatmul.msk.bf16.gmra.mxu1 %vm492_vm14, %v598_v0 }
 0x23c   :  { %v668_v2 = vpop.f32.mrf.mxu0 }
 0x23d   :  { %v669_v4 = vadd.f32 %v668_v2, %v1233_v1 }
 0x23f   :  { %v712_v6 = vmax.f32 %v669_v4, 0.0 }
 0x241   :  { %v730_v7 = vmul.f32 %v1238_v5, %v712_v6 }
 0x243   :  { %v747_v8 = vsel %vm492_vm14, %v730_v7, 0.0 }
 0x244   :  { %v670_v3 = vpop.f32.mrf.mxu0  ;;  %748 = vadd.xlane.f32.xlu2 %v747_v8 }
 0x245   :  { %v671_v9 = vadd.f32 %v670_v3, %v1233_v1 }
 0x247   :  { %v713_v10 = vmax.f32 %v671_v9, 0.0 }
 0x249   :  { %v731_v36 = vmul.f32 %v1238_v5, %v713_v10 }
 0x24b   :  { %v750_v11 = vsel %vm492_vm14, %v731_v36, 0.0 }
 0x24c   :  { %v673_v12 = vpop.f32.mrf.mxu0  ;;  %751 = vadd.xlane.f32.xlu0 %v750_v11 }
 0x24d   :  { %v674_v13 = vadd.f32 %v673_v12, %v1233_v1 }
 0x24f   :  { %v714_v35 = vmax.f32 %v674_v13, 0.0 }
 0x251   :  { %v732_v14 = vmul.f32 %v1238_v5, %v714_v35 }
 0x253   :  { %v753_v15 = vsel %vm492_vm14, %v732_v14, 0.0 }
 0x254   :  { %v675_v16 = vpop.f32.mrf.mxu0  ;;  %754 = vadd.xlane.f32.xlu1 %v753_v15 }
 0x255   :  { %v676_v17 = vadd.f32 %v675_v16, %v1233_v1 }
 0x257   :  { %v715_v18 = vmax.f32 %v676_v17, 0.0 }
 0x258   :  { %v678_v19 = vpop.f32.mrf.mxu1 }
 0x259   :  { %v679_v20 = vadd.f32 %v678_v19, %v1233_v1  ;;  %v733_v21 = vmul.f32 %v1238_v5, %v715_v18 }
 0x25b   :  { %v716_v22 = vmax.f32 %v679_v20, 0.0  ;;  %v756_v23 = vsel %vm492_vm14, %v733_v21, 0.0 }
 0x25c   :  { %757 = vadd.xlane.f32.xlu2 %v756_v23 }
 0x25d   :  { %v734_v24 = vmul.f32 %v1238_v5, %v716_v22 }
 0x25f   :  { %v759_v29 = vsel %vm492_vm14, %v734_v24, 0.0 }
 0x260   :  { %v680_v25 = vpop.f32.mrf.mxu1 }
 0x261   :  { %v681_v26 = vadd.f32 %v680_v25, %v1233_v1 }
 0x263   :  { %v717_v27 = vmax.f32 %v681_v26, 0.0 }
 0x264   :  { %760 = vadd.xlane.f32.xlu2 %v759_v29 }
 0x265   :  { %v735_v30 = vmul.f32 %v1238_v5, %v717_v27 }
 0x267   :  { %v762_v32 = vsel %vm492_vm14, %v735_v30, 0.0 }
 0x268   :  { %v683_v33 = vpop.f32.mrf.mxu1  ;;  %763 = vadd.xlane.f32.xlu0 %v762_v32 }
 0x269   :  { %v684_v28 = vadd.f32 %v683_v33, %v1233_v1 }
 0x26b   :  { %v718_v37 = vmax.f32 %v684_v28, 0.0 }
 0x26d   :  { %v736_v38 = vmul.f32 %v1238_v5, %v718_v37 }
 0x26f   :  { %v765_v39 = vsel %vm492_vm14, %v736_v38, 0.0 }
 0x270   :  { %v685_v40 = vpop.f32.mrf.mxu1  ;;  %766 = vadd.xlane.f32.xlu1 %v765_v39 }
 0x271   :  { %v686_v41 = vadd.f32 %v685_v40, %v1233_v1 }
 0x273   :  { %v719_v42 = vmax.f32 %v686_v41, 0.0 }
 0x275   :  { %v737_v43 = vmul.f32 %v1238_v5, %v719_v42 }
 0x277   :  { %v768_v31 = vsel %vm492_vm14, %v737_v43, 0.0 }
 0x278   :  { %v688_v44 = vpop.f32.mrf.mxu1  ;;  %769 = vadd.xlane.f32.xlu2 %v768_v31 }
 0x279   :  { %v689_v45 = vadd.f32 %v688_v44, %v1233_v1 }
 0x27b   :  { %v720_v46 = vmax.f32 %v689_v45, 0.0 }
 0x27d   :  { %v738_v47 = vmul.f32 %v1238_v5, %v720_v46 }
 0x27f   :  { %v771_v48 = vsel %vm492_vm14, %v738_v47, 0.0 }
 0x280   :  { %v690_v34 = vpop.f32.mrf.mxu1  ;;  %772 = vadd.xlane.f32.xlu0 %v771_v48 }
 0x281   :  { %v691_v49 = vadd.f32 %v690_v34, %v1233_v1 }
 0x283   :  { %v721_v50 = vmax.f32 %v691_v49, 0.0 }
 0x285   :  { %v739_v51 = vmul.f32 %v1238_v5, %v721_v50 }
 0x287   :  { %v774_v52 = vsel %vm492_vm14, %v739_v51, 0.0 }
 0x288   :  { %v693_v53 = vpop.f32.mrf.mxu1  ;;  %775 = vadd.xlane.f32.xlu1 %v774_v52 }
 0x289   :  { %v694_v54 = vadd.f32 %v693_v53, %v1233_v1 }
 0x28b   :  { %v722_v55 = vmax.f32 %v694_v54, 0.0 }
 0x28d   :  { %v740_v56 = vmul.f32 %v1238_v5, %v722_v55 }
 0x28f   :  { %v777_v57 = vsel %vm492_vm14, %v740_v56, 0.0 }
 0x290   :  { %v695_v58 = vpop.f32.mrf.mxu1  ;;  %778 = vadd.xlane.f32.xlu2 %v777_v57 }
 0x291   :  { %v696_v59 = vadd.f32 %v695_v58, %v1233_v1 }
 0x293   :  { %v723_v60 = vmax.f32 %v696_v59, 0.0 }
 0x295   :  { %v741_v61 = vmul.f32 %v1238_v5, %v723_v60 }
 0x297   :  { %v780_v62 = vsel %vm492_vm14, %v741_v61, 0.0 }
 0x298   :  { %v698_v63 = vpop.f32.mrf.mxu1  ;;  %781 = vadd.xlane.f32.xlu0 %v780_v62 }
 0x299   :  { %v699_v0 = vadd.f32 %v698_v63, %v1233_v1 }
 0x29b   :  { %v724_v2 = vmax.f32 %v699_v0, 0.0 }
 0x29d   :  { %v742_v4 = vmul.f32 %v1238_v5, %v724_v2 }
 0x29f   :  { %v783_v6 = vsel %vm492_vm14, %v742_v4, 0.0 }
 0x2a0   :  { %v700_v7 = vpop.f32.mrf.mxu1  ;;  %784 = vadd.xlane.f32.xlu1 %v783_v6 }
 0x2a1   :  { %v701_v8 = vadd.f32 %v700_v7, %v1233_v1 }
 0x2a3   :  { %v725_v3 = vmax.f32 %v701_v8, 0.0 }
 0x2a5   :  { %v743_v9 = vmul.f32 %v1238_v5, %v725_v3 }
 0x2a7   :  { %v786_v10 = vsel %vm492_vm14, %v743_v9, 0.0 }
 0x2a8   :  { %v703_v36 = vpop.f32.mrf.mxu1  ;;  %787 = vadd.xlane.f32.xlu2 %v786_v10 }
 0x2a9   :  { %v704_v11 = vadd.f32 %v703_v36, %v1233_v1 }
 0x2ab   :  { %v726_v12 = vmax.f32 %v704_v11, 0.0 }
 0x2ad   :  { %v744_v13 = vmul.f32 %v1238_v5, %v726_v12 }
 0x2af   :  { %v789_v35 = vsel %vm492_vm14, %v744_v13, 0.0 }
 0x2b0   :  { %v705_v14 = vpop.f32.mrf.mxu1  ;;  %790 = vadd.xlane.f32.xlu0 %v789_v35 }
 0x2b1   :  { %v706_v15 = vadd.f32 %v705_v14, %v1233_v1 }
 0x2b3   :  { %v727_v16 = vmax.f32 %v706_v15, 0.0 }
 0x2b5   :  { %v745_v17 = vmul.f32 %v1238_v5, %v727_v16 }
 0x2b7   :  { %v749_v18 = vpop.xlane.xlu2 %748  ;;  %v792_v19 = vsel %vm492_vm14, %v745_v17, 0.0 }
 0x2b8   :  { %799 = vst.msk [vmem:[%s1362_s4] sm:$0xff] %vm798_vm8, %v749_v18  ;;  %v708_v20 = vpop.f32.mrf.mxu1  ;;  %793 = vadd.xlane.f32.xlu1 %v792_v19 }
 0x2b9   :  { %v709_v21 = vadd.f32 %v708_v20, %v1233_v1 }
 0x2bb   :  { %v728_v22 = vmax.f32 %v709_v21, 0.0 }
 0x2bd   :  { %v746_v23 = vmul.f32 %v1238_v5, %v728_v22 }
 0x2bf   :  { %v752_v24 = vpop.xlane.xlu0 %751  ;;  %v795_v25 = vsel %vm492_vm14, %v746_v23, 0.0 }
 0x2c0   :  { %800 = vst.msk [vmem:[%s1362_s4 + $0x8] sm:$0xff] %vm798_vm8, %v752_v24  ;;  %v710_v26 = vpop.f32.mrf.mxu1  ;;  %796 = vadd.xlane.f32.xlu2 %v795_v25 }
 0x2c7   :  { %v755_v27 = vpop.xlane.xlu1 %754 }
 0x2c8   :  { %801 = vst.msk [vmem:[%s1362_s4 + $0x10] sm:$0xff] %vm798_vm8, %v755_v27 }
 0x2cf   :  { %v758_v1 = vpop.xlane.xlu2 %757 }
 0x2d0   :  { %802 = vst.msk [vmem:[%s1362_s4 + $0x18] sm:$0xff] %vm798_vm8, %v758_v1 }
 0x2d7   :  { %v761_v5 = vpop.xlane.xlu2 %760 }
 0x2d8   :  { %803 = vst.msk [vmem:[%s1362_s4 + $0x20] sm:$0xff] %vm798_vm8, %v761_v5 }
 0x2db   :  { %v764_v29 = vpop.xlane.xlu0 %763 }
 0x2dc   :  { %804 = vst.msk [vmem:[%s1362_s4 + $0x28] sm:$0xff] %vm798_vm8, %v764_v29 }
 0x2e3   :  { %v767_v30 = vpop.xlane.xlu1 %766 }
 0x2e4   :  { %805 = vst.msk [vmem:[%s1362_s4 + $0x30] sm:$0xff] %vm798_vm8, %v767_v30 }
 0x2eb   :  { %v770_v32 = vpop.xlane.xlu2 %769 }
 0x2ec   :  { %806 = vst.msk [vmem:[%s1362_s4 + $0x38] sm:$0xff] %vm798_vm8, %v770_v32 }
 0x2f3   :  { %v773_v33 = vpop.xlane.xlu0 %772 }
 0x2f4   :  { %807 = vst.msk [vmem:[%s1362_s4 + $0x40] sm:$0xff] %vm798_vm8, %v773_v33 }
 0x2fb   :  { %v776_v28 = vpop.xlane.xlu1 %775 }
 0x2fc   :  { %808 = vst.msk [vmem:[%s1362_s4 + $0x48] sm:$0xff] %vm798_vm8, %v776_v28 }
 0x303   :  { %v779_v37 = vpop.xlane.xlu2 %778 }
 0x304   :  { %809 = vst.msk [vmem:[%s1362_s4 + $0x50] sm:$0xff] %vm798_vm8, %v779_v37 }
 0x30b   :  { %v782_v38 = vpop.xlane.xlu0 %781 }
 0x30c   :  { %810 = vst.msk [vmem:[%s1362_s4 + $0x58] sm:$0xff] %vm798_vm8, %v782_v38 }
 0x313   :  { %v785_v39 = vpop.xlane.xlu1 %784 }
 0x314   :  { %811 = vst.msk [vmem:[%s1362_s4 + $0x60] sm:$0xff] %vm798_vm8, %v785_v39 }
 0x31b   :  { %v788_v40 = vpop.xlane.xlu2 %787 }
 0x31c   :  { %812 = vst.msk [vmem:[%s1362_s4 + $0x68] sm:$0xff] %vm798_vm8, %v788_v40 }
 0x323   :  { %v791_v41 = vpop.xlane.xlu0 %790 }
 0x324   :  { %813 = vst.msk [vmem:[%s1362_s4 + $0x70] sm:$0xff] %vm798_vm8, %v791_v41 }
 0x32b   :  { %v794_v42 = vpop.xlane.xlu1 %793 }
 0x32c   :  { %814 = vst.msk [vmem:[%s1362_s4 + $0x78] sm:$0xff] %vm798_vm8, %v794_v42 }
 0x333   :  { %v797_v43 = vpop.xlane.xlu2 %796 }
 0x334   :  { %815 = vst.msk [vmem:[%s1362_s4 + $0x80] sm:$0xff] %vm798_vm8, %v797_v43 }

</bundles_post_ra>
